<compile_context>
chip_gen: v7x
topology: tpu7x:2x2x1
jax: 0.10.0
libtpu: 0.0.40
codegen_flags: <defaults>
</compile_context>

<pallas_src>
import functools
import math

import jax
import jax.numpy as jnp
from jax.experimental import pallas as pl
from jax.experimental.pallas import tpu as pltpu

EPS = 1e-5  # LayerNorm eps
_MIB = 1024 * 1024


def _round_up(x, m):
    return ((x + m - 1) // m) * m


def _vmem_capacity_bytes():
    """Generation-aware VMEM capacity; conservative (v7x per-core) fallback."""
    try:
        return int(pltpu.get_tpu_info().vmem_capacity_bytes)
    except Exception:
        return 64 * _MIB


def _working_bytes(tile_m, tile_h, c, wsize, nbuf_w):
    """Rough per-step VMEM footprint estimate for limit / tiling heuristics."""
    weights = nbuf_w * 3 * c * tile_h * wsize          # W1a + W1b + W2 blocks
    xio = 2 * 2 * tile_m * c * 4                       # x + out tiles, double-buffered
    scratch = tile_m * c * (wsize + 4)                 # cached LN output + f32 acc
    interm = 3 * tile_m * tile_h * 4                   # a, b, g f32 live values
    return weights + xio + scratch + interm


def _transition_kernel(x_ref, gamma_ref, beta_ref, mask_ref,
                       w1a_ref, w1b_ref, w2_ref, o_ref,
                       xn_ref, acc_ref):
    """One (tile_m, C) row tile; grid axis 1 streams the hidden dimension."""
    k = pl.program_id(1)

    @pl.when(k == 0)
    def _prologue():
        # LayerNorm in f32, one-pass statistics: var = E[x^2] - mean^2.
        x = x_ref[...].astype(jnp.float32)
        mean = jnp.mean(x, axis=-1, keepdims=True)
        var = jnp.maximum(jnp.mean(x * x, axis=-1, keepdims=True) - mean * mean, 0.0)
        xn = (x - mean) * jax.lax.rsqrt(var + EPS)
        xn = xn * gamma_ref[...] + beta_ref[...]
        xn_ref[...] = xn.astype(xn_ref.dtype)           # cached for all hidden chunks
        acc_ref[...] = jnp.zeros_like(acc_ref)

    # SwiGLU is elementwise over the hidden dim -> exact when chunked over k.
    xn = xn_ref[...]
    a = jnp.dot(xn, w1a_ref[...], preferred_element_type=jnp.float32)
    b = jnp.dot(xn, w1b_ref[...], preferred_element_type=jnp.float32)
    g = (a * jax.nn.sigmoid(a)) * b
    acc_ref[...] += jnp.dot(g.astype(w2_ref.dtype), w2_ref[...],
                            preferred_element_type=jnp.float32)

    @pl.when(k == pl.num_programs(1) - 1)
    def _epilogue():
        # Mask fold-in: a free VPU op hidden under the MXU-bound main loop.
        o_ref[...] = (acc_ref[...] * mask_ref[...]).astype(o_ref.dtype)


def prepare_transition_params(gamma, beta, w1, w2, *, matmul_dtype=jnp.bfloat16):
    """One-time parameter prep (split W1 into a/b halves, cast to MXU dtype).

    Hoisted out of the per-call path so the full-weight converts do not run on
    every invocation.  Weights are stored (in_features, out_features).
    """
    c = gamma.shape[-1]
    hidden = w1.shape[1] // 2
    return dict(
        gamma=gamma.reshape(1, c).astype(jnp.float32),
        beta=beta.reshape(1, c).astype(jnp.float32),
        w1a=jnp.asarray(w1[:, :hidden], dtype=matmul_dtype),
        w1b=jnp.asarray(w1[:, hidden:], dtype=matmul_dtype),
        w2=jnp.asarray(w2, dtype=matmul_dtype),
    )


def transition_pallas(x, mask, params, *, tile_m=None, tile_h=512):
    """x: [*, N_token, C]; mask: [*, N_token] or None; params from prepare_*."""
    *lead, n_tok, c = x.shape
    hidden = params["w1a"].shape[1]
    matmul_dtype = params["w1a"].dtype
    wsize = jnp.dtype(matmul_dtype).itemsize

    m_total = math.prod((*lead, n_tok))
    x2 = x.reshape(m_total, c)
    if mask is None:
        mask2 = jnp.ones((m_total, 1), dtype=jnp.float32)
    else:
        mask2 = mask.reshape(m_total, 1).astype(jnp.float32)

    # ---- tiling decisions -------------------------------------------------
    vmem_cap = _vmem_capacity_bytes()
    if tile_m is None:
        # 128 MiB VMEM parts (v5e/v6e) amortize per-step overhead best at 512
        # rows; stay at 256 on v7x (64 MiB) / unknown hardware.
        tile_m = 512 if vmem_cap >= 96 * _MIB else 256
    tile_m = _round_up(max(8, min(tile_m, _round_up(m_total, 8))), 8)

    # Keep the whole hidden dim resident (weights loaded once, single-buffered)
    # when everything fits comfortably; otherwise stream tile_h-wide chunks.
    fits_resident = _working_bytes(tile_m, hidden, c, wsize, nbuf_w=1) + 16 * _MIB <= vmem_cap
    can_tile_h = (tile_h < hidden) and (hidden % tile_h == 0) and (tile_h % 128 == 0)
    if fits_resident or not can_tile_h:
        tile_h = hidden
    grid_m = pl.cdiv(m_total, tile_m)
    grid_h = hidden // tile_h

    nbuf_w = 1 if grid_h == 1 else 2
    footprint = (_working_bytes(tile_m, tile_h, c, wsize, nbuf_w)
                 + 4 * c * 4 + 4 * tile_m * 4)           # gamma/beta/mask blocks
    vmem_limit = int(min(max(32 * _MIB, footprint + 16 * _MIB), vmem_cap - 12 * _MIB))

    cost = pl.CostEstimate(
        flops=int(6 * m_total * c * hidden),             # two dots into H + one back to C
        transcendentals=int(m_total * hidden),           # sigmoid in SiLU
        bytes_accessed=int(2 * m_total * c * x.dtype.itemsize
                           + (grid_m if grid_h > 1 else 1) * 3 * c * hidden * wsize
                           + 2 * m_total * 4),
    )

    # ---- pallas_call ------------------------------------------------------
    def build(single_buffer_weights):
        def wspec(shape, imap):
            if single_buffer_weights:
                # Grid-invariant weights: one VMEM buffer instead of two.
                return pl.BlockSpec(shape, imap, pipeline_mode=pl.Buffered(1))
            return pl.BlockSpec(shape, imap)

        return pl.pallas_call(
            _transition_kernel,
            out_shape=jax.ShapeDtypeStruct((m_total, c), x.dtype),
            grid=(grid_m, grid_h),
            in_specs=[
                pl.BlockSpec((tile_m, c), lambda i, k: (i, 0)),   # x rows (resident over k)
                pl.BlockSpec((1, c), lambda i, k: (0, 0)),        # gamma
                pl.BlockSpec((1, c), lambda i, k: (0, 0)),        # beta
                pl.BlockSpec((tile_m, 1), lambda i, k: (i, 0)),   # mask column
                wspec((c, tile_h), lambda i, k: (0, k)),          # W1a
                wspec((c, tile_h), lambda i, k: (0, k)),          # W1b
                wspec((tile_h, c), lambda i, k: (k, 0)),          # W2
            ],
            out_specs=pl.BlockSpec((tile_m, c), lambda i, k: (i, 0)),
            scratch_shapes=[
                pltpu.VMEM((tile_m, c), matmul_dtype),            # cached LayerNorm output
                pltpu.VMEM((tile_m, c), jnp.float32),             # f32 accumulator
            ],
            compiler_params=pltpu.CompilerParams(
                dimension_semantics=("parallel", "arbitrary"),
                vmem_limit_bytes=vmem_limit,
            ),
            cost_estimate=cost,
        )

    args = (x2, params["gamma"], params["beta"], mask2,
            params["w1a"], params["w1b"], params["w2"])

    single_buffer = (grid_h == 1) and hasattr(pl, "Buffered")
    if single_buffer:
        try:
            out2 = build(True)(*args)
        except Exception:
            # pipeline_mode=Buffered(1) unsupported on this jax version/backend:
            # fall back to the default (double-buffered) weight specs.
            out2 = build(False)(*args)
    else:
        out2 = build(False)(*args)

    return out2.reshape(*lead, n_tok, c)


def transition_reference(x, mask, gamma, beta, w1, w2):
    """Pure-JAX f32 reference mirroring the PyTorch forward."""
    xf = x.astype(jnp.float32)
    mean = jnp.mean(xf, axis=-1, keepdims=True)
    var = jnp.mean(jnp.square(xf - mean), axis=-1, keepdims=True)
    xn = (xf - mean) / jnp.sqrt(var + EPS) * gamma + beta
    h = xn @ w1
    hidden = w1.shape[1] // 2
    a, b = h[..., :hidden], h[..., hidden:]
    y = (a * jax.nn.sigmoid(a) * b) @ w2
    if mask is None:
        return y
    return y * mask[..., None]


if __name__ == "__main__":
    key = jax.random.PRNGKey(0)
    k1, k2, k3, k4, k5, k6 = jax.random.split(key, 6)

    # Module hyperparameters (small, consistent with the forward)
    batch, n_token, c, transition_n = 2, 8, 32, 4
    hidden = transition_n * c  # 128

    # Inputs
    x = jax.random.normal(k1, (batch, n_token, c), dtype=jnp.float32)
    mask = (jax.random.uniform(k2, (batch, n_token)) > 0.2).astype(jnp.float32)

    # Parameters (Linear layers have no bias in this module); weights are
    # stored (in_features, out_features).
    gamma = 1.0 + 0.1 * jax.random.normal(k5, (c,), dtype=jnp.float32)
    beta = 0.1 * jax.random.normal(k6, (c,), dtype=jnp.float32)
    w1 = jax.random.normal(k3, (c, 2 * hidden), dtype=jnp.float32) * 0.05
    w2 = jax.random.normal(k4, (hidden, c), dtype=jnp.float32) * 0.05

    params = prepare_transition_params(gamma, beta, w1, w2)   # one-time prep
    out = transition_pallas(x, mask, params)
    out = jax.block_until_ready(out)

    ref = transition_reference(x, mask, gamma, beta, w1, w2)
    assert out.shape == (batch, n_token, c)
    # bf16 MXU operands (f32 accumulation) -> slightly looser tolerance.
    assert jnp.allclose(out, ref, atol=2e-2, rtol=2e-2), "mismatch vs reference"

    print("KERNEL_OK")
</pallas_src>

<mosaic_0001>
module attributes {stable_mosaic.version = 11 : i64} {
  func.func @_transition_kernel(%arg0: i32, %arg1: i32, %arg2: memref<16x32xf32, #tpu.memory_space<vmem>>, %arg3: memref<1x32xf32, #tpu.memory_space<vmem>>, %arg4: memref<1x32xf32, #tpu.memory_space<vmem>>, %arg5: memref<16x1xf32, #tpu.memory_space<vmem>>, %arg6: memref<32x128xbf16, #tpu.memory_space<vmem>>, %arg7: memref<32x128xbf16, #tpu.memory_space<vmem>>, %arg8: memref<128x32xbf16, #tpu.memory_space<vmem>>, %arg9: memref<16x32xf32, #tpu.memory_space<vmem>>, %arg10: memref<16x32xbf16, #tpu.memory_space<vmem>>, %arg11: memref<16x32xf32, #tpu.memory_space<vmem>>) attributes {dimension_semantics = [#tpu.dimension_semantics<parallel>, #tpu.dimension_semantics<arbitrary>], iteration_bounds = array<i64: 1, 1>, scalar_prefetch = 0 : i64, scratch_operands = 2 : i64, tpu.core_type = #tpu.core_type<tc>, window_params = [{transform_indices = @transform_0, window_bounds = array<i64: 16, 32>}, {pipeline_mode = #tpu.pipeline_mode<synchronous>, transform_indices = @transform_1, window_bounds = array<i64: 1, 32>}, {pipeline_mode = #tpu.pipeline_mode<synchronous>, transform_indices = @transform_2, window_bounds = array<i64: 1, 32>}, {transform_indices = @transform_3, window_bounds = array<i64: 16, 1>}, {pipeline_mode = #tpu.pipeline_mode<synchronous>, transform_indices = @transform_4, window_bounds = array<i64: 32, 128>}, {pipeline_mode = #tpu.pipeline_mode<synchronous>, transform_indices = @transform_5, window_bounds = array<i64: 32, 128>}, {pipeline_mode = #tpu.pipeline_mode<synchronous>, transform_indices = @transform_6, window_bounds = array<i64: 128, 32>}, {transform_indices = @transform_7, window_bounds = array<i64: 16, 32>}]} {
    %c0_i32 = arith.constant 0 : i32
    %0 = arith.cmpi eq, %arg1, %c0_i32 : i32
    %1 = arith.extui %0 : i1 to i32
    %c0_i32_0 = arith.constant 0 : i32
    %2 = arith.cmpi ne, %1, %c0_i32_0 : i32
    scf.if %2 {
      %c0_17 = arith.constant 0 : index
      %c0_18 = arith.constant 0 : index
      %24 = vector.load %arg2[%c0_17, %c0_18] : memref<16x32xf32, #tpu.memory_space<vmem>>, vector<16x32xf32>
      %cst_19 = arith.constant dense<0.000000e+00> : vector<16xf32>
      %25 = vector.multi_reduction <add>, %24, %cst_19 [1] : vector<16x32xf32> to vector<16xf32>
      %26 = vector.shape_cast %25 : vector<16xf32> to vector<16x1xf32>
      %cst_20 = arith.constant 3.200000e+01 : f32
      %27 = vector.broadcast %cst_20 : f32 to vector<16x1xf32>
      %28 = arith.divf %26, %27 : vector<16x1xf32>
      %29 = arith.mulf %24, %24 : vector<16x32xf32>
      %cst_21 = arith.constant dense<0.000000e+00> : vector<16xf32>
      %30 = vector.multi_reduction <add>, %29, %cst_21 [1] : vector<16x32xf32> to vector<16xf32>
      %31 = vector.shape_cast %30 : vector<16xf32> to vector<16x1xf32>
      %cst_22 = arith.constant 3.200000e+01 : f32
      %32 = vector.broadcast %cst_22 : f32 to vector<16x1xf32>
      %33 = arith.divf %31, %32 : vector<16x1xf32>
      %34 = arith.mulf %28, %28 : vector<16x1xf32>
      %35 = arith.subf %33, %34 : vector<16x1xf32>
      %cst_23 = arith.constant 0.000000e+00 : f32
      %36 = vector.broadcast %cst_23 : f32 to vector<16x1xf32>
      %37 = arith.maximumf %35, %36 : vector<16x1xf32>
      %38 = vector.broadcast %28 : vector<16x1xf32> to vector<16x32xf32>
      %39 = arith.subf %24, %38 : vector<16x32xf32>
      %cst_24 = arith.constant 9.99999974E-6 : f32
      %40 = vector.broadcast %cst_24 : f32 to vector<16x1xf32>
      %41 = arith.addf %37, %40 : vector<16x1xf32>
      %42 = math.rsqrt %41 : vector<16x1xf32>
      %43 = vector.broadcast %42 : vector<16x1xf32> to vector<16x32xf32>
      %44 = arith.mulf %39, %43 : vector<16x32xf32>
      %c0_25 = arith.constant 0 : index
      %c0_26 = arith.constant 0 : index
      %45 = vector.load %arg3[%c0_25, %c0_26] : memref<1x32xf32, #tpu.memory_space<vmem>>, vector<1x32xf32>
      %46 = vector.broadcast %45 : vector<1x32xf32> to vector<16x32xf32>
      %47 = arith.mulf %44, %46 : vector<16x32xf32>
      %c0_27 = arith.constant 0 : index
      %c0_28 = arith.constant 0 : index
      %48 = vector.load %arg4[%c0_27, %c0_28] : memref<1x32xf32, #tpu.memory_space<vmem>>, vector<1x32xf32>
      %49 = vector.broadcast %48 : vector<1x32xf32> to vector<16x32xf32>
      %50 = arith.addf %47, %49 : vector<16x32xf32>
      %51 = arith.truncf %50 : vector<16x32xf32> to vector<16x32xbf16>
      %c0_29 = arith.constant 0 : index
      %c0_30 = arith.constant 0 : index
      %52 = vector.load %arg10[%c0_29, %c0_30] : memref<16x32xbf16, #tpu.memory_space<vmem>>, vector<16x32xbf16>
      tpu.vector_store %arg10[%c0_29, %c0_30], %51 {strides = array<i32>} : memref<16x32xbf16, #tpu.memory_space<vmem>>, vector<16x32xbf16>,
      %cst_31 = arith.constant 0.000000e+00 : f32
      %53 = vector.broadcast %cst_31 : f32 to vector<16x32xf32>
      %c0_32 = arith.constant 0 : index
      %c0_33 = arith.constant 0 : index
      %54 = vector.load %arg11[%c0_32, %c0_33] : memref<16x32xf32, #tpu.memory_space<vmem>>, vector<16x32xf32>
      tpu.vector_store %arg11[%c0_32, %c0_33], %53 {strides = array<i32>} : memref<16x32xf32, #tpu.memory_space<vmem>>, vector<16x32xf32>,
    } else {
    }
    %c0 = arith.constant 0 : index
    %c0_1 = arith.constant 0 : index
    %3 = vector.load %arg10[%c0, %c0_1] : memref<16x32xbf16, #tpu.memory_space<vmem>>, vector<16x32xbf16>
    %c0_2 = arith.constant 0 : index
    %c0_3 = arith.constant 0 : index
    %4 = vector.load %arg6[%c0_2, %c0_3] : memref<32x128xbf16, #tpu.memory_space<vmem>>, vector<32x128xbf16>
    %cst = arith.constant dense<0.000000e+00> : vector<16x128xf32>
    %5 = tpu.matmul %3, %4, %cst {dimension_numbers = #tpu.dot_dimension_numbers<[1], [0], [0], [1], [0, 0, 1, 1], [], []>} : vector<16x32xbf16>, vector<32x128xbf16>, vector<16x128xf32> -> vector<16x128xf32>
    %c0_4 = arith.constant 0 : index
    %c0_5 = arith.constant 0 : index
    %6 = vector.load %arg7[%c0_4, %c0_5] : memref<32x128xbf16, #tpu.memory_space<vmem>>, vector<32x128xbf16>
    %cst_6 = arith.constant dense<0.000000e+00> : vector<16x128xf32>
    %7 = tpu.matmul %3, %6, %cst_6 {dimension_numbers = #tpu.dot_dimension_numbers<[1], [0], [0], [1], [0, 0, 1, 1], [], []>} : vector<16x32xbf16>, vector<32x128xbf16>, vector<16x128xf32> -> vector<16x128xf32>
    %8 = arith.negf %5 : vector<16x128xf32>
    %9 = math.exp %8 : vector<16x128xf32>
    %cst_7 = arith.constant 1.000000e+00 : f32
    %10 = vector.broadcast %cst_7 : f32 to vector<16x128xf32>
    %11 = arith.addf %10, %9 : vector<16x128xf32>
    %12 = arith.divf %10, %11 : vector<16x128xf32>
    %13 = arith.mulf %5, %12 : vector<16x128xf32>
    %14 = arith.mulf %13, %7 : vector<16x128xf32>
    %c0_8 = arith.constant 0 : index
    %c0_9 = arith.constant 0 : index
    %15 = vector.load %arg11[%c0_8, %c0_9] : memref<16x32xf32, #tpu.memory_space<vmem>>, vector<16x32xf32>
    %16 = arith.truncf %14 : vector<16x128xf32> to vector<16x128xbf16>
    %c0_10 = arith.constant 0 : index
    %c0_11 = arith.constant 0 : index
    %17 = vector.load %arg8[%c0_10, %c0_11] : memref<128x32xbf16, #tpu.memory_space<vmem>>, vector<128x32xbf16>
    %cst_12 = arith.constant dense<0.000000e+00> : vector<16x32xf32>
    %18 = tpu.matmul %16, %17, %cst_12 {dimension_numbers = #tpu.dot_dimension_numbers<[1], [0], [0], [1], [0, 0, 1, 1], [], []>} : vector<16x128xbf16>, vector<128x32xbf16>, vector<16x32xf32> -> vector<16x32xf32>
    %19 = arith.addf %15, %18 : vector<16x32xf32>
    %c0_13 = arith.constant 0 : index
    %c0_14 = arith.constant 0 : index
    %20 = vector.load %arg11[%c0_13, %c0_14] : memref<16x32xf32, #tpu.memory_space<vmem>>, vector<16x32xf32>
    tpu.vector_store %arg11[%c0_13, %c0_14], %19 {strides = array<i32>} : memref<16x32xf32, #tpu.memory_space<vmem>>, vector<16x32xf32>,
    %c0_i32_15 = arith.constant 0 : i32
    %21 = arith.cmpi eq, %arg1, %c0_i32_15 : i32
    %22 = arith.extui %21 : i1 to i32
    %c0_i32_16 = arith.constant 0 : i32
    %23 = arith.cmpi ne, %22, %c0_i32_16 : i32
    scf.if %23 {
      %c0_17 = arith.constant 0 : index
      %c0_18 = arith.constant 0 : index
      %24 = vector.load %arg11[%c0_17, %c0_18] : memref<16x32xf32, #tpu.memory_space<vmem>>, vector<16x32xf32>
      %c0_19 = arith.constant 0 : index
      %c0_20 = arith.constant 0 : index
      %25 = vector.load %arg5[%c0_19, %c0_20] : memref<16x1xf32, #tpu.memory_space<vmem>>, vector<16x1xf32>
      %26 = vector.broadcast %25 : vector<16x1xf32> to vector<16x32xf32>
      %27 = arith.mulf %24, %26 : vector<16x32xf32>
      %c0_21 = arith.constant 0 : index
      %c0_22 = arith.constant 0 : index
      %28 = vector.load %arg9[%c0_21, %c0_22] : memref<16x32xf32, #tpu.memory_space<vmem>>, vector<16x32xf32>
      tpu.vector_store %arg9[%c0_21, %c0_22], %27 {strides = array<i32>} : memref<16x32xf32, #tpu.memory_space<vmem>>, vector<16x32xf32>,
    } else {
    }
    return
  }
  func.func @transform_0(%arg0: i32, %arg1: i32) -> (i32, i32) {
    %c0_i32 = arith.constant 0 : i32
    %c0_i32_0 = arith.constant 0 : i32
    return %arg0, %c0_i32 : i32, i32
  }
  func.func @transform_1(%arg0: i32, %arg1: i32) -> (i32, i32) {
    %c0_i32 = arith.constant 0 : i32
    %c0_i32_0 = arith.constant 0 : i32
    %c0_i32_1 = arith.constant 0 : i32
    return %c0_i32, %c0_i32_0 : i32, i32
  }
  func.func @transform_2(%arg0: i32, %arg1: i32) -> (i32, i32) {
    %c0_i32 = arith.constant 0 : i32
    %c0_i32_0 = arith.constant 0 : i32
    %c0_i32_1 = arith.constant 0 : i32
    return %c0_i32, %c0_i32_0 : i32, i32
  }
  func.func @transform_3(%arg0: i32, %arg1: i32) -> (i32, i32) {
    %c0_i32 = arith.constant 0 : i32
    %c0_i32_0 = arith.constant 0 : i32
    return %arg0, %c0_i32 : i32, i32
  }
  func.func @transform_4(%arg0: i32, %arg1: i32) -> (i32, i32) {
    %c0_i32 = arith.constant 0 : i32
    %c0_i32_0 = arith.constant 0 : i32
    return %c0_i32, %arg1 : i32, i32
  }
  func.func @transform_5(%arg0: i32, %arg1: i32) -> (i32, i32) {
    %c0_i32 = arith.constant 0 : i32
    %c0_i32_0 = arith.constant 0 : i32
    return %c0_i32, %arg1 : i32, i32
  }
  func.func @transform_6(%arg0: i32, %arg1: i32) -> (i32, i32) {
    %c0_i32 = arith.constant 0 : i32
    %c0_i32_0 = arith.constant 0 : i32
    return %arg1, %c0_i32 : i32, i32
  }
  func.func @transform_7(%arg0: i32, %arg1: i32) -> (i32, i32) {
    %c0_i32 = arith.constant 0 : i32
    %c0_i32_0 = arith.constant 0 : i32
    return %arg0, %c0_i32 : i32, i32
  }
}

module attributes {stable_mosaic.version = 11 : i64} {
  func.func @_transition_kernel(%arg0: i32, %arg1: i32, %arg2: memref<16x32xf32, #tpu.memory_space<vmem>>, %arg3: memref<1x32xf32, #tpu.memory_space<vmem>>, %arg4: memref<1x32xf32, #tpu.memory_space<vmem>>, %arg5: memref<16x1xf32, #tpu.memory_space<vmem>>, %arg6: memref<32x128xbf16, #tpu.memory_space<vmem>>, %arg7: memref<32x128xbf16, #tpu.memory_space<vmem>>, %arg8: memref<128x32xbf16, #tpu.memory_space<vmem>>, %arg9: memref<16x32xf32, #tpu.memory_space<vmem>>, %arg10: memref<16x32xbf16, #tpu.memory_space<vmem>>, %arg11: memref<16x32xf32, #tpu.memory_space<vmem>>) attributes {dimension_semantics = [#tpu.dimension_semantics<parallel>, #tpu.dimension_semantics<arbitrary>], iteration_bounds = array<i64: 1, 1>, scalar_prefetch = 0 : i64, scratch_operands = 2 : i64, tpu.core_type = #tpu.core_type<tc>, window_params = [{transform_indices = @transform_0, window_bounds = array<i64: 16, 32>}, {pipeline_mode = #tpu.pipeline_mode<synchronous>, transform_indices = @transform_1, window_bounds = array<i64: 1, 32>}, {pipeline_mode = #tpu.pipeline_mode<synchronous>, transform_indices = @transform_2, window_bounds = array<i64: 1, 32>}, {transform_indices = @transform_3, window_bounds = array<i64: 16, 1>}, {transform_indices = @transform_4, window_bounds = array<i64: 32, 128>}, {transform_indices = @transform_5, window_bounds = array<i64: 32, 128>}, {transform_indices = @transform_6, window_bounds = array<i64: 128, 32>}, {transform_indices = @transform_7, window_bounds = array<i64: 16, 32>}]} {
    %c0_i32 = arith.constant 0 : i32
    %0 = arith.cmpi eq, %arg1, %c0_i32 : i32
    %1 = arith.extui %0 : i1 to i32
    %c0_i32_0 = arith.constant 0 : i32
    %2 = arith.cmpi ne, %1, %c0_i32_0 : i32
    scf.if %2 {
      %c0_17 = arith.constant 0 : index
      %c0_18 = arith.constant 0 : index
      %24 = vector.load %arg2[%c0_17, %c0_18] : memref<16x32xf32, #tpu.memory_space<vmem>>, vector<16x32xf32>
      %cst_19 = arith.constant dense<0.000000e+00> : vector<16xf32>
      %25 = vector.multi_reduction <add>, %24, %cst_19 [1] : vector<16x32xf32> to vector<16xf32>
      %26 = vector.shape_cast %25 : vector<16xf32> to vector<16x1xf32>
      %cst_20 = arith.constant 3.200000e+01 : f32
      %27 = vector.broadcast %cst_20 : f32 to vector<16x1xf32>
      %28 = arith.divf %26, %27 : vector<16x1xf32>
      %29 = arith.mulf %24, %24 : vector<16x32xf32>
      %cst_21 = arith.constant dense<0.000000e+00> : vector<16xf32>
      %30 = vector.multi_reduction <add>, %29, %cst_21 [1] : vector<16x32xf32> to vector<16xf32>
      %31 = vector.shape_cast %30 : vector<16xf32> to vector<16x1xf32>
      %cst_22 = arith.constant 3.200000e+01 : f32
      %32 = vector.broadcast %cst_22 : f32 to vector<16x1xf32>
      %33 = arith.divf %31, %32 : vector<16x1xf32>
      %34 = arith.mulf %28, %28 : vector<16x1xf32>
      %35 = arith.subf %33, %34 : vector<16x1xf32>
      %cst_23 = arith.constant 0.000000e+00 : f32
      %36 = vector.broadcast %cst_23 : f32 to vector<16x1xf32>
      %37 = arith.maximumf %35, %36 : vector<16x1xf32>
      %38 = vector.broadcast %28 : vector<16x1xf32> to vector<16x32xf32>
      %39 = arith.subf %24, %38 : vector<16x32xf32>
      %cst_24 = arith.constant 9.99999974E-6 : f32
      %40 = vector.broadcast %cst_24 : f32 to vector<16x1xf32>
      %41 = arith.addf %37, %40 : vector<16x1xf32>
      %42 = math.rsqrt %41 : vector<16x1xf32>
      %43 = vector.broadcast %42 : vector<16x1xf32> to vector<16x32xf32>
      %44 = arith.mulf %39, %43 : vector<16x32xf32>
      %c0_25 = arith.constant 0 : index
      %c0_26 = arith.constant 0 : index
      %45 = vector.load %arg3[%c0_25, %c0_26] : memref<1x32xf32, #tpu.memory_space<vmem>>, vector<1x32xf32>
      %46 = vector.broadcast %45 : vector<1x32xf32> to vector<16x32xf32>
      %47 = arith.mulf %44, %46 : vector<16x32xf32>
      %c0_27 = arith.constant 0 : index
      %c0_28 = arith.constant 0 : index
      %48 = vector.load %arg4[%c0_27, %c0_28] : memref<1x32xf32, #tpu.memory_space<vmem>>, vector<1x32xf32>
      %49 = vector.broadcast %48 : vector<1x32xf32> to vector<16x32xf32>
      %50 = arith.addf %47, %49 : vector<16x32xf32>
      %51 = arith.truncf %50 : vector<16x32xf32> to vector<16x32xbf16>
      %c0_29 = arith.constant 0 : index
      %c0_30 = arith.constant 0 : index
      %52 = vector.load %arg10[%c0_29, %c0_30] : memref<16x32xbf16, #tpu.memory_space<vmem>>, vector<16x32xbf16>
      tpu.vector_store %arg10[%c0_29, %c0_30], %51 {strides = array<i32>} : memref<16x32xbf16, #tpu.memory_space<vmem>>, vector<16x32xbf16>,
      %cst_31 = arith.constant 0.000000e+00 : f32
      %53 = vector.broadcast %cst_31 : f32 to vector<16x32xf32>
      %c0_32 = arith.constant 0 : index
      %c0_33 = arith.constant 0 : index
      %54 = vector.load %arg11[%c0_32, %c0_33] : memref<16x32xf32, #tpu.memory_space<vmem>>, vector<16x32xf32>
      tpu.vector_store %arg11[%c0_32, %c0_33], %53 {strides = array<i32>} : memref<16x32xf32, #tpu.memory_space<vmem>>, vector<16x32xf32>,
    } else {
    }
    %c0 = arith.constant 0 : index
    %c0_1 = arith.constant 0 : index
    %3 = vector.load %arg10[%c0, %c0_1] : memref<16x32xbf16, #tpu.memory_space<vmem>>, vector<16x32xbf16>
    %c0_2 = arith.constant 0 : index
    %c0_3 = arith.constant 0 : index
    %4 = vector.load %arg6[%c0_2, %c0_3] : memref<32x128xbf16, #tpu.memory_space<vmem>>, vector<32x128xbf16>
    %cst = arith.constant dense<0.000000e+00> : vector<16x128xf32>
    %5 = tpu.matmul %3, %4, %cst {dimension_numbers = #tpu.dot_dimension_numbers<[1], [0], [0], [1], [0, 0, 1, 1], [], []>} : vector<16x32xbf16>, vector<32x128xbf16>, vector<16x128xf32> -> vector<16x128xf32>
    %c0_4 = arith.constant 0 : index
    %c0_5 = arith.constant 0 : index
    %6 = vector.load %arg7[%c0_4, %c0_5] : memref<32x128xbf16, #tpu.memory_space<vmem>>, vector<32x128xbf16>
    %cst_6 = arith.constant dense<0.000000e+00> : vector<16x128xf32>
    %7 = tpu.matmul %3, %6, %cst_6 {dimension_numbers = #tpu.dot_dimension_numbers<[1], [0], [0], [1], [0, 0, 1, 1], [], []>} : vector<16x32xbf16>, vector<32x128xbf16>, vector<16x128xf32> -> vector<16x128xf32>
    %8 = arith.negf %5 : vector<16x128xf32>
    %9 = math.exp %8 : vector<16x128xf32>
    %cst_7 = arith.constant 1.000000e+00 : f32
    %10 = vector.broadcast %cst_7 : f32 to vector<16x128xf32>
    %11 = arith.addf %10, %9 : vector<16x128xf32>
    %12 = arith.divf %10, %11 : vector<16x128xf32>
    %13 = arith.mulf %5, %12 : vector<16x128xf32>
    %14 = arith.mulf %13, %7 : vector<16x128xf32>
    %c0_8 = arith.constant 0 : index
    %c0_9 = arith.constant 0 : index
    %15 = vector.load %arg11[%c0_8, %c0_9] : memref<16x32xf32, #tpu.memory_space<vmem>>, vector<16x32xf32>
    %16 = arith.truncf %14 : vector<16x128xf32> to vector<16x128xbf16>
    %c0_10 = arith.constant 0 : index
    %c0_11 = arith.constant 0 : index
    %17 = vector.load %arg8[%c0_10, %c0_11] : memref<128x32xbf16, #tpu.memory_space<vmem>>, vector<128x32xbf16>
    %cst_12 = arith.constant dense<0.000000e+00> : vector<16x32xf32>
    %18 = tpu.matmul %16, %17, %cst_12 {dimension_numbers = #tpu.dot_dimension_numbers<[1], [0], [0], [1], [0, 0, 1, 1], [], []>} : vector<16x128xbf16>, vector<128x32xbf16>, vector<16x32xf32> -> vector<16x32xf32>
    %19 = arith.addf %15, %18 : vector<16x32xf32>
    %c0_13 = arith.constant 0 : index
    %c0_14 = arith.constant 0 : index
    %20 = vector.load %arg11[%c0_13, %c0_14] : memref<16x32xf32, #tpu.memory_space<vmem>>, vector<16x32xf32>
    tpu.vector_store %arg11[%c0_13, %c0_14], %19 {strides = array<i32>} : memref<16x32xf32, #tpu.memory_space<vmem>>, vector<16x32xf32>,
    %c0_i32_15 = arith.constant 0 : i32
    %21 = arith.cmpi eq, %arg1, %c0_i32_15 : i32
    %22 = arith.extui %21 : i1 to i32
    %c0_i32_16 = arith.constant 0 : i32
    %23 = arith.cmpi ne, %22, %c0_i32_16 : i32
    scf.if %23 {
      %c0_17 = arith.constant 0 : index
      %c0_18 = arith.constant 0 : index
      %24 = vector.load %arg11[%c0_17, %c0_18] : memref<16x32xf32, #tpu.memory_space<vmem>>, vector<16x32xf32>
      %c0_19 = arith.constant 0 : index
      %c0_20 = arith.constant 0 : index
      %25 = vector.load %arg5[%c0_19, %c0_20] : memref<16x1xf32, #tpu.memory_space<vmem>>, vector<16x1xf32>
      %26 = vector.broadcast %25 : vector<16x1xf32> to vector<16x32xf32>
      %27 = arith.mulf %24, %26 : vector<16x32xf32>
      %c0_21 = arith.constant 0 : index
      %c0_22 = arith.constant 0 : index
      %28 = vector.load %arg9[%c0_21, %c0_22] : memref<16x32xf32, #tpu.memory_space<vmem>>, vector<16x32xf32>
      tpu.vector_store %arg9[%c0_21, %c0_22], %27 {strides = array<i32>} : memref<16x32xf32, #tpu.memory_space<vmem>>, vector<16x32xf32>,
    } else {
    }
    return
  }
  func.func @transform_0(%arg0: i32, %arg1: i32) -> (i32, i32) {
    %c0_i32 = arith.constant 0 : i32
    %c0_i32_0 = arith.constant 0 : i32
    return %arg0, %c0_i32 : i32, i32
  }
  func.func @transform_1(%arg0: i32, %arg1: i32) -> (i32, i32) {
    %c0_i32 = arith.constant 0 : i32
    %c0_i32_0 = arith.constant 0 : i32
    %c0_i32_1 = arith.constant 0 : i32
    return %c0_i32, %c0_i32_0 : i32, i32
  }
  func.func @transform_2(%arg0: i32, %arg1: i32) -> (i32, i32) {
    %c0_i32 = arith.constant 0 : i32
    %c0_i32_0 = arith.constant 0 : i32
    %c0_i32_1 = arith.constant 0 : i32
    return %c0_i32, %c0_i32_0 : i32, i32
  }
  func.func @transform_3(%arg0: i32, %arg1: i32) -> (i32, i32) {
    %c0_i32 = arith.constant 0 : i32
    %c0_i32_0 = arith.constant 0 : i32
    return %arg0, %c0_i32 : i32, i32
  }
  func.func @transform_4(%arg0: i32, %arg1: i32) -> (i32, i32) {
    %c0_i32 = arith.constant 0 : i32
    %c0_i32_0 = arith.constant 0 : i32
    return %c0_i32, %arg1 : i32, i32
  }
  func.func @transform_5(%arg0: i32, %arg1: i32) -> (i32, i32) {
    %c0_i32 = arith.constant 0 : i32
    %c0_i32_0 = arith.constant 0 : i32
    return %c0_i32, %arg1 : i32, i32
  }
  func.func @transform_6(%arg0: i32, %arg1: i32) -> (i32, i32) {
    %c0_i32 = arith.constant 0 : i32
    %c0_i32_0 = arith.constant 0 : i32
    return %arg1, %c0_i32 : i32, i32
  }
  func.func @transform_7(%arg0: i32, %arg1: i32) -> (i32, i32) {
    %c0_i32 = arith.constant 0 : i32
    %c0_i32_0 = arith.constant 0 : i32
    return %arg0, %c0_i32 : i32, i32
  }
}

</mosaic_0001>

<bundles_post_ra>
// kernel: tpu_custom_call.1
= control target key start
LH: loop header
LB: loop body
LE: loop exit
PB: predicated region body
PF: predicated region fallthrough
CT: control target
= control target key end

     0   :  { %vm34_vm0 = vcmask 261120   ;;  %s644_s0 = inlined_call_operand.vmem [shape: f32[16,32], index: 0, kind: input, shape index: {}]   ;;  %s645_s1 = inlined_call_operand.vmem [shape: f32[1,32], index: 1, kind: input, shape index: {}]   ;;  %s646_s2 = inlined_call_operand.vmem [shape: f32[1,32], index: 2, kind: input, shape index: {}]   ;;  %s647_s3 = inlined_call_operand.vmem [shape: f32[16,1], index: 3, kind: input, shape index: {}]   ;;  %s648_s4 = inlined_call_operand.vmem [shape: bf16[32,128], index: 4, kind: input, shape index: {}]   ;;  %s649_s5 = inlined_call_operand.vmem [shape: bf16[32,128], index: 5, kind: input, shape index: {}]   ;;  %s650_s6 = inlined_call_operand.vmem [shape: bf16[128,32], index: 6, kind: input, shape index: {}]   ;;  %s651_s7 = inlined_call_operand.hbm [shape: f32[16,32], index: 7, kind: output, shape index: {}]  }
   0x1   :  { %v32_v0 = vld [vmem:[%s644_s0] sm:$0xff]  ;;  %v33_v1 = vld [vmem:[%s644_s0 + $0x8] sm:$0xff] }
   0x2   :  { %v35_v2 = vsel %vm34_vm0, %v32_v0, 0.0  ;;  %v44_v3 = vmul.f32 %v32_v0, %v32_v0  ;;  %v38_v4 = vsel %vm34_vm0, %v33_v1, 0.0  ;;  %v45_v5 = vmul.f32 %v33_v1, %v33_v1 }
   0x3   :  { %36 = vadd.xlane.f32.xlu0 %v35_v2 }
   0x4   :  { %v46_v6 = vsel %vm34_vm0, %v44_v3, 0.0  ;;  %v49_v7 = vsel %vm34_vm0, %v45_v5, 0.0 }
   0x5   :  { %47 = vadd.xlane.f32.xlu1 %v46_v6 }
   0x7   :  { %39 = vadd.xlane.f32.xlu0 %v38_v4 }
   0x9   :  { %50 = vadd.xlane.f32.xlu1 %v49_v7 }
   0xa   :  { %12 = vsyncpa [#allocation5], 0  ;;  %v451_v8 = vld [vmem:[%s648_s4] sm:$0xff]   ;;  %v499_v9 = vmov 0.0   ;;  %v452_v10 = vld [vmem:[%s648_s4 + $0x8] sm:$0xff]   ;;  %vm500_vm1 = vmmov 0  }
   0xb   :  { %407 = vmatprep.subr.bf16.mxu1 %v499_v9  ;;  %88 = vst.msk [vmem:[#allocation3] sm:$0xff] %vm34_vm0, %v499_v9  ;;  %89 = vst.msk [vmem:[#allocation3 + $0x8] sm:$0xff] %vm34_vm0, %v499_v9  ;;  %423 = vmatprep.subr.bf16.mxu0 %v499_v9  ;;  %v374_v30 = vld [vmem:[%s645_s1] ss:$0 sm:$0xff]  ;;  %v454_v42 = vld [vmem:[%s649_s5 + $0x8] sm:$0xff]   ;;  %v501_v53 = vmov 0  }
   0xc   :  { %408 = vmatpush3.bf16.msra.mxu1 %v451_v8  ;;  %411 = vmatprep.mubr.msk.bf16.mxu1 %vm500_vm1, %v499_v9  ;;  %v375_v35 = vld [vmem:[%s646_s2] ss:$0 sm:$0xff]  ;;  %v456_v44 = vld [vmem:[%s650_s6 + $0x8] sm:$0xff]   ;;  %v457_v45 = vld [vmem:[%s650_s6 + $0x10] sm:$0xff]  }
   0xd   :  { %409 = vmatprep.subr.bf16.mxu1 %v499_v9  ;;  %439 = vmatprep.mubr.msk.bf16.mxu0 %vm500_vm1, %v499_v9  ;;  %v453_v40 = vld [vmem:[%s649_s5] sm:$0xff]   ;;  %v458_v46 = vld [vmem:[%s650_s6 + $0x18] sm:$0xff]   ;;  %v460_v48 = vld [vmem:[%s650_s6 + $0x28] sm:$0xff]  }
   0xe   :  { %v455_v43 = vld [vmem:[%s650_s6] sm:$0xff]   ;;  %v461_v49 = vld [vmem:[%s650_s6 + $0x30] sm:$0xff]   ;;  %v462_v50 = vld [vmem:[%s650_s6 + $0x38] sm:$0xff]   ;;  %449 = vset.pattern.permute.xlu0 %v501_v53  ;;  %450 = vset.pattern.permute.xlu1 %v501_v53 }
   0xf   :  { %424 = vmatpush3.bf16.msra.mxu0 %v455_v43  ;;  %v459_v47 = vld [vmem:[%s650_s6 + $0x20] sm:$0xff]   ;;  %v343_v52 = vld [vmem:[%s647_s3 + $0x8] sm:$0xff] }
  0x10   :  { %410 = vmatpush3.bf16.msra.mxu1 %v452_v10  ;;  %425 = vmatprep.subr.bf16.mxu0 %v499_v9  ;;  %v342_v51 = vld [vmem:[%s647_s3] sm:$0xff]  ;;  %s502_s3 = smov [#allocation4]  }
  0x11   :  { %415 = vmatprep.subr.bf16.mxu1 %v499_v9  ;;  %s363_s6 = sshll.u32 %s502_s3, 4  ;;  %s364_s6 = int_to_ptr.vmem [resolvable:$true] %s363_s6 }
  0x12   :  { %s475_s4 = scalar_lea.vmem %s364_s6, 256  ;;  %p480_p1 = scmp.lt.s32.totalorder %s364_s6, %s364_s6 }
  0x13   :  { %426 = vmatpush3.bf16.msra.mxu0 %v456_v44  ;;  %p476_p0 = scmp.ne.s32.totalorder %s364_s6, %s475_s4  ;;  %p481_p2 = scmp.lt.s32.totalorder %s475_s4, %s475_s4 }
  0x14   :  { %427 = vmatprep.subr.bf16.mxu0 %v499_v9 }
  0x15   :  { %p482_p3 = por %p481_p2, %p480_p1 }
  0x17   :  { %428 = vmatpush3.bf16.msra.mxu0 %v457_v45  ;;  %p483_p4 = pnand %p482_p3, %p476_p0 }
  0x18   :  { %429 = vmatprep.subr.bf16.mxu0 %v499_v9 }
  0x1a   :  { %351 = vperm.xlu1 %450, %v343_v52  }
  0x1b   :  { %430 = vmatpush3.bf16.msra.mxu0 %v458_v46 }
  0x1c   :  { %431 = vmatprep.subr.bf16.mxu0 %v499_v9 }
  0x1d   :  { %346 = vperm.xlu0 %449, %v342_v51  }
  0x1f   :  { %432 = vmatpush3.bf16.msra.mxu0 %v459_v47 }
  0x20   :  { %433 = vmatprep.subr.bf16.mxu0 %v499_v9 }
  0x23   :  { %434 = vmatpush3.bf16.msra.mxu0 %v460_v48 }
  0x24   :  { %435 = vmatprep.subr.bf16.mxu0 %v499_v9 }
  0x27   :  { %436 = vmatpush3.bf16.msra.mxu0 %v461_v49 }
  0x28   :  { %437 = vmatprep.subr.bf16.mxu0 %v499_v9 }
  0x2b   :  { %438 = vmatpush3.bf16.msra.mxu0 %v462_v50 }
  0x90   :  { %v37_v11 = vpop.xlane.xlu0 %36 }
  0x91   :  { %v42_v12 = vmul.f32 0.03125, %v37_v11  ;;  %v225_v11 = vld [vmem:[#allocation3] sm:$0xff] }
  0x92   :  { %v48_v13 = vpop.xlane.xlu1 %47 }
  0x93   :  { %v54_v14 = vmul.f32 %v42_v12, %v42_v12  ;;  %v52_v15 = vmul.f32 0.03125, %v48_v13  ;;  %v60_v27 = vsub.f32 %v32_v0, %v42_v12  ;;  %v226_v13 = vld [vmem:[#allocation3 + $0x8] sm:$0xff] }
  0x94   :  { %v40_v16 = vpop.xlane.xlu0 %39 }
  0x95   :  { %v56_v17 = vsub.f32 %v52_v15, %v54_v14  ;;  %v43_v18 = vmul.f32 0.03125, %v40_v16 }
  0x96   :  { %v51_v19 = vpop.xlane.xlu1 %50 }
  0x97   :  { %v58_v20 = vmax.f32 %v56_v17, 0.0  ;;  %v55_v21 = vmul.f32 %v43_v18, %v43_v18  ;;  %v53_v22 = vmul.f32 0.03125, %v51_v19  ;;  %v61_v31 = vsub.f32 %v33_v1, %v43_v18 }
  0x99   :  { %v62_v23 = vadd.f32 1e-05, %v58_v20  ;;  %v57_v24 = vsub.f32 %v53_v22, %v55_v21 }
  0x9a   :  { %v352_v21 = vpop.permute.xlu1 %351 }
  0x9b   :  { %463 = vrsqrt.f32 %v62_v23  ;;  %v59_v25 = vmax.f32 %v57_v24, 0.0 }
  0x9c   :  { %v347_v19 = vpop.permute.xlu0 %346 }
  0x9d   :  { %v63_v26 = vadd.f32 1e-05, %v59_v25 }
  0x9f   :  { %465 = vrsqrt.f32 %v63_v26 }
  0xa5   :  { %v464_v28 = vpop.eup %463 }
  0xa6   :  { %v66_v29 = vmul.f32 %v464_v28, %v60_v27 }
  0xa8   :  { %v75_v33 = vmul.f32 %v374_v30, %v66_v29 }
  0xa9   :  { %v466_v32 = vpop.eup %465 }
  0xaa   :  { %v67_v34 = vmul.f32 %v466_v32, %v61_v31  ;;  %v84_v37 = vadd.f32 %v375_v35, %v75_v33 }
  0xac   :  { %v76_v36 = vmul.f32 %v374_v30, %v67_v34 }
  0xae   :  { %v85_v38 = vadd.f32 %v375_v35, %v76_v36 }
  0xb0   :  { %v86_v39 = vpack.c.bf16 %v85_v38, %v84_v37 }
  0xb2   :  { %87 = vst.msk [vmem:[#allocation2] sm:$0xff] %vm34_vm0, %v86_v39 }
  0xb9   :  { %v90_v41 = vld [vmem:[#allocation2] sm:$0xff] }
  0xba   :  { %412 = vmatmul.mubr.msk.bf16.vlgmr.msra.gmra.mrb[0].mxu1 %vm34_vm0, %v90_v41 }
  0xbb   :  { %416 = vmatpush3.bf16.msra.mxu1 %v453_v40  ;;  %419 = vmatprep.mubr.msk.bf16.mxu1 %vm500_vm1, %v499_v9 }
  0xbc   :  { %417 = vmatprep.subr.bf16.mxu1 %v499_v9 }
  0xbf   :  { %418 = vmatpush3.bf16.msra.mxu1 %v454_v42 }
  0xc2   :  { %420 = vmatmul.mubr.msk.bf16.vlgmr.msra.gmra.mrb[4].mxu1 %vm34_vm0, %v90_v41 }
 0x18d   :  { %v145_v54 = vpop.f32.mrb[0].mxu1 }
 0x18e   :  { %v382_v55 = vmul.f32 -1.442695, %v145_v54  ;;  %v413_v56 = vpop.f32.mrb[1].mxu1 }
 0x18f   :  { %v148_v57 = vpop.f32.mrb[2].mxu1 }
 0x190   :  { %467 = vpow2.f32 %v382_v55  ;;  %v383_v58 = vmul.f32 -1.442695, %v148_v57  ;;  %v414_v59 = vpop.f32.mrb[3].mxu1 }
 0x192   :  { %469 = vpow2.f32 %v383_v58 }
 0x195   :  { %v202_v60 = vpop.f32.mrb[4].mxu1 }
 0x196   :  { %v421_v61 = vpop.f32.mrb[5].mxu1 }
 0x197   :  { %v205_v62 = vpop.f32.mrb[6].mxu1 }
 0x198   :  { %v422_v63 = vpop.f32.mrb[7].mxu1 }
 0x19a   :  { %v468_v0 = vpop.eup %467 }
 0x19b   :  { %v215_v1 = vadd.f32 1.0, %v468_v0 }
 0x19c   :  { %v470_v2 = vpop.eup %469 }
 0x19d   :  { %471 = vrcp.f32 %v215_v1  ;;  %v216_v3 = vadd.f32 1.0, %v470_v2 }
 0x19f   :  { %473 = vrcp.f32 %v216_v3 }
 0x1a7   :  { %v472_v4 = vpop.eup %471 }
 0x1a8   :  { %v221_v5 = vmul.f32 %v472_v4, %v145_v54 }
 0x1a9   :  { %v474_v6 = vpop.eup %473 }
 0x1aa   :  { %v222_v7 = vmul.f32 %v474_v6, %v148_v57  ;;  %v223_v8 = vmul.f32 %v221_v5, %v202_v60 }
 0x1ac   :  { %v224_v9 = vmul.f32 %v222_v7, %v205_v62 }
 0x1ae   :  { %v227_v10 = vpack.c.bf16 %v224_v9, %v223_v8 }
 0x1b0   :  { %440 = vmatmul.mubr.bf16.vlgmr.msra.gmra.mrb[0].mxu0 %v227_v10 }
 0x283   :  { %v326_v12 = vpop.f32.mrb[0].mxu0 }
 0x284   :  { %v333_v14 = vadd.f32 %v326_v12, %v225_v11  ;;  %v441_v15 = vpop.f32.mrb[1].mxu0 }
 0x285   :  { %v329_v16 = vpop.f32.mrb[2].mxu0 }
 0x286   :  { %335 = vst.msk [vmem:[#allocation3] sm:$0xff] %vm34_vm0, %v333_v14  ;;  %v334_v17 = vadd.f32 %v329_v16, %v226_v13  ;;  %v442_v18 = vpop.f32.mrb[3].mxu0 }
 0x288   :  { %336 = vst.msk [vmem:[#allocation3 + $0x8] sm:$0xff] %vm34_vm0, %v334_v17 }
 0x28d   :  { %v340_v20 = vld [vmem:[#allocation3] sm:$0xff] }
 0x28e   :  { %v354_v22 = vmul.f32 %v347_v19, %v340_v20 }
 0x28f   :  { %v341_v23 = vld [vmem:[#allocation3 + $0x8] sm:$0xff] }
 0x290   :  { %356 = vst.msk [vmem:[#allocation4] sm:$0xff] %vm34_vm0, %v354_v22  ;;  %v355_v24 = vmul.f32 %v352_v21, %v341_v23 }
 0x292   :  { %357 = vst.msk [vmem:[#allocation4 + $0x8] sm:$0xff] %vm34_vm0, %v355_v24 }
 0x293   :  { %486 = shalt.err (!%p483_p4)
}
 0x294   :  { %s487_s10 = scalar_lea.hbm %s651_s7, 256 }
 0x295   :  { %p488_p5 = scmp.ne.s32.totalorder %s651_s7, %s487_s10  ;;  %p491_p6 = scmp.lt.u32.totalorder %s487_s10, %s651_s7 }
 0x297   :  { %p493_p7 = pnand %p491_p6, %p488_p5 }
 0x299   :  { %496 = shalt.err (!%p493_p7)
}
 0x29a   :  { %s503_s2 = smov 128   ;;  %s504_s14 = smov 8  }
 0x29b   :  { %369 = dma.vmem_to_hbm [thread:$0]  %s364_s6, 256, %s651_s7, [#allocation5], %s503_s2, %s503_s2, %s504_s14  }
 0x29c   :  { %497 = dma.done.wait [#allocation5], 256  }
 0x29d   :  { %498 = vsyncadd [#allocation5], 4294967040 }
 0x29e   :  { %373 = vsyncpa [#allocation5], 1 }

// kernel: tpu_custom_call.1
= control target key start
LH: loop header
LB: loop body
LE: loop exit
PB: predicated region body
PF: predicated region fallthrough
CT: control target
= control target key end

     0   :  { %vm34_vm0 = vcmask 261120   ;;  %s644_s0 = inlined_call_operand.vmem [shape: f32[16,32], index: 0, kind: input, shape index: {}]   ;;  %s645_s1 = inlined_call_operand.vmem [shape: f32[1,32], index: 1, kind: input, shape index: {}]   ;;  %s646_s2 = inlined_call_operand.vmem [shape: f32[1,32], index: 2, kind: input, shape index: {}]   ;;  %s647_s3 = inlined_call_operand.vmem [shape: f32[16,1], index: 3, kind: input, shape index: {}]   ;;  %s648_s4 = inlined_call_operand.vmem [shape: bf16[32,128], index: 4, kind: input, shape index: {}]   ;;  %s649_s5 = inlined_call_operand.vmem [shape: bf16[32,128], index: 5, kind: input, shape index: {}]   ;;  %s650_s6 = inlined_call_operand.vmem [shape: bf16[128,32], index: 6, kind: input, shape index: {}]   ;;  %s651_s7 = inlined_call_operand.hbm [shape: f32[16,32], index: 7, kind: output, shape index: {}]  }
   0x1   :  { %v32_v0 = vld [vmem:[%s644_s0] sm:$0xff]  ;;  %v33_v1 = vld [vmem:[%s644_s0 + $0x8] sm:$0xff] }
   0x2   :  { %v35_v2 = vsel %vm34_vm0, %v32_v0, 0.0  ;;  %v44_v3 = vmul.f32 %v32_v0, %v32_v0  ;;  %v38_v4 = vsel %vm34_vm0, %v33_v1, 0.0  ;;  %v45_v5 = vmul.f32 %v33_v1, %v33_v1 }
   0x3   :  { %36 = vadd.xlane.f32.xlu0 %v35_v2 }
   0x4   :  { %v46_v6 = vsel %vm34_vm0, %v44_v3, 0.0  ;;  %v49_v7 = vsel %vm34_vm0, %v45_v5, 0.0 }
   0x5   :  { %47 = vadd.xlane.f32.xlu1 %v46_v6 }
   0x7   :  { %39 = vadd.xlane.f32.xlu0 %v38_v4 }
   0x9   :  { %50 = vadd.xlane.f32.xlu1 %v49_v7 }
   0xa   :  { %12 = vsyncpa [#allocation5], 0  ;;  %v451_v8 = vld [vmem:[%s648_s4] sm:$0xff]   ;;  %v499_v9 = vmov 0.0   ;;  %v452_v10 = vld [vmem:[%s648_s4 + $0x8] sm:$0xff]   ;;  %vm500_vm1 = vmmov 0  }
   0xb   :  { %407 = vmatprep.subr.bf16.mxu1 %v499_v9  ;;  %88 = vst.msk [vmem:[#allocation3] sm:$0xff] %vm34_vm0, %v499_v9  ;;  %89 = vst.msk [vmem:[#allocation3 + $0x8] sm:$0xff] %vm34_vm0, %v499_v9  ;;  %423 = vmatprep.subr.bf16.mxu0 %v499_v9  ;;  %v374_v30 = vld [vmem:[%s645_s1] ss:$0 sm:$0xff]  ;;  %v454_v42 = vld [vmem:[%s649_s5 + $0x8] sm:$0xff]   ;;  %v501_v53 = vmov 0  }
   0xc   :  { %408 = vmatpush3.bf16.msra.mxu1 %v451_v8  ;;  %411 = vmatprep.mubr.msk.bf16.mxu1 %vm500_vm1, %v499_v9  ;;  %v375_v35 = vld [vmem:[%s646_s2] ss:$0 sm:$0xff]  ;;  %v456_v44 = vld [vmem:[%s650_s6 + $0x8] sm:$0xff]   ;;  %v457_v45 = vld [vmem:[%s650_s6 + $0x10] sm:$0xff]  }
   0xd   :  { %409 = vmatprep.subr.bf16.mxu1 %v499_v9  ;;  %439 = vmatprep.mubr.msk.bf16.mxu0 %vm500_vm1, %v499_v9  ;;  %v453_v40 = vld [vmem:[%s649_s5] sm:$0xff]   ;;  %v458_v46 = vld [vmem:[%s650_s6 + $0x18] sm:$0xff]   ;;  %v460_v48 = vld [vmem:[%s650_s6 + $0x28] sm:$0xff]  }
   0xe   :  { %v455_v43 = vld [vmem:[%s650_s6] sm:$0xff]   ;;  %v461_v49 = vld [vmem:[%s650_s6 + $0x30] sm:$0xff]   ;;  %v462_v50 = vld [vmem:[%s650_s6 + $0x38] sm:$0xff]   ;;  %449 = vset.pattern.permute.xlu0 %v501_v53  ;;  %450 = vset.pattern.permute.xlu1 %v501_v53 }
   0xf   :  { %424 = vmatpush3.bf16.msra.mxu0 %v455_v43  ;;  %v459_v47 = vld [vmem:[%s650_s6 + $0x20] sm:$0xff]   ;;  %v343_v52 = vld [vmem:[%s647_s3 + $0x8] sm:$0xff] }
  0x10   :  { %410 = vmatpush3.bf16.msra.mxu1 %v452_v10  ;;  %425 = vmatprep.subr.bf16.mxu0 %v499_v9  ;;  %v342_v51 = vld [vmem:[%s647_s3] sm:$0xff]  ;;  %s502_s3 = smov [#allocation4]  }
  0x11   :  { %415 = vmatprep.subr.bf16.mxu1 %v499_v9  ;;  %s363_s6 = sshll.u32 %s502_s3, 4  ;;  %s364_s6 = int_to_ptr.vmem [resolvable:$true] %s363_s6 }
  0x12   :  { %s475_s4 = scalar_lea.vmem %s364_s6, 256  ;;  %p480_p1 = scmp.lt.s32.totalorder %s364_s6, %s364_s6 }
  0x13   :  { %426 = vmatpush3.bf16.msra.mxu0 %v456_v44  ;;  %p476_p0 = scmp.ne.s32.totalorder %s364_s6, %s475_s4  ;;  %p481_p2 = scmp.lt.s32.totalorder %s475_s4, %s475_s4 }
  0x14   :  { %427 = vmatprep.subr.bf16.mxu0 %v499_v9 }
  0x15   :  { %p482_p3 = por %p481_p2, %p480_p1 }
  0x17   :  { %428 = vmatpush3.bf16.msra.mxu0 %v457_v45  ;;  %p483_p4 = pnand %p482_p3, %p476_p0 }
  0x18   :  { %429 = vmatprep.subr.bf16.mxu0 %v499_v9 }
  0x1a   :  { %351 = vperm.xlu1 %450, %v343_v52  }
  0x1b   :  { %430 = vmatpush3.bf16.msra.mxu0 %v458_v46 }
  0x1c   :  { %431 = vmatprep.subr.bf16.mxu0 %v499_v9 }
  0x1d   :  { %346 = vperm.xlu0 %449, %v342_v51  }
  0x1f   :  { %432 = vmatpush3.bf16.msra.mxu0 %v459_v47 }
  0x20   :  { %433 = vmatprep.subr.bf16.mxu0 %v499_v9 }
  0x23   :  { %434 = vmatpush3.bf16.msra.mxu0 %v460_v48 }
  0x24   :  { %435 = vmatprep.subr.bf16.mxu0 %v499_v9 }
  0x27   :  { %436 = vmatpush3.bf16.msra.mxu0 %v461_v49 }
  0x28   :  { %437 = vmatprep.subr.bf16.mxu0 %v499_v9 }
  0x2b   :  { %438 = vmatpush3.bf16.msra.mxu0 %v462_v50 }
  0x90   :  { %v37_v11 = vpop.xlane.xlu0 %36 }
  0x91   :  { %v42_v12 = vmul.f32 0.03125, %v37_v11  ;;  %v225_v11 = vld [vmem:[#allocation3] sm:$0xff] }
  0x92   :  { %v48_v13 = vpop.xlane.xlu1 %47 }
  0x93   :  { %v54_v14 = vmul.f32 %v42_v12, %v42_v12  ;;  %v52_v15 = vmul.f32 0.03125, %v48_v13  ;;  %v60_v27 = vsub.f32 %v32_v0, %v42_v12  ;;  %v226_v13 = vld [vmem:[#allocation3 + $0x8] sm:$0xff] }
  0x94   :  { %v40_v16 = vpop.xlane.xlu0 %39 }
  0x95   :  { %v56_v17 = vsub.f32 %v52_v15, %v54_v14  ;;  %v43_v18 = vmul.f32 0.03125, %v40_v16 }
  0x96   :  { %v51_v19 = vpop.xlane.xlu1 %50 }
  0x97   :  { %v58_v20 = vmax.f32 %v56_v17, 0.0  ;;  %v55_v21 = vmul.f32 %v43_v18, %v43_v18  ;;  %v53_v22 = vmul.f32 0.03125, %v51_v19  ;;  %v61_v31 = vsub.f32 %v33_v1, %v43_v18 }
  0x99   :  { %v62_v23 = vadd.f32 1e-05, %v58_v20  ;;  %v57_v24 = vsub.f32 %v53_v22, %v55_v21 }
  0x9a   :  { %v352_v21 = vpop.permute.xlu1 %351 }
  0x9b   :  { %463 = vrsqrt.f32 %v62_v23  ;;  %v59_v25 = vmax.f32 %v57_v24, 0.0 }
  0x9c   :  { %v347_v19 = vpop.permute.xlu0 %346 }
  0x9d   :  { %v63_v26 = vadd.f32 1e-05, %v59_v25 }
  0x9f   :  { %465 = vrsqrt.f32 %v63_v26 }
  0xa5   :  { %v464_v28 = vpop.eup %463 }
  0xa6   :  { %v66_v29 = vmul.f32 %v464_v28, %v60_v27 }
  0xa8   :  { %v75_v33 = vmul.f32 %v374_v30, %v66_v29 }
  0xa9   :  { %v466_v32 = vpop.eup %465 }
  0xaa   :  { %v67_v34 = vmul.f32 %v466_v32, %v61_v31  ;;  %v84_v37 = vadd.f32 %v375_v35, %v75_v33 }
  0xac   :  { %v76_v36 = vmul.f32 %v374_v30, %v67_v34 }
  0xae   :  { %v85_v38 = vadd.f32 %v375_v35, %v76_v36 }
  0xb0   :  { %v86_v39 = vpack.c.bf16 %v85_v38, %v84_v37 }
  0xb2   :  { %87 = vst.msk [vmem:[#allocation2] sm:$0xff] %vm34_vm0, %v86_v39 }
  0xb9   :  { %v90_v41 = vld [vmem:[#allocation2] sm:$0xff] }
  0xba   :  { %412 = vmatmul.mubr.msk.bf16.vlgmr.msra.gmra.mrb[0].mxu1 %vm34_vm0, %v90_v41 }
  0xbb   :  { %416 = vmatpush3.bf16.msra.mxu1 %v453_v40  ;;  %419 = vmatprep.mubr.msk.bf16.mxu1 %vm500_vm1, %v499_v9 }
  0xbc   :  { %417 = vmatprep.subr.bf16.mxu1 %v499_v9 }
  0xbf   :  { %418 = vmatpush3.bf16.msra.mxu1 %v454_v42 }
  0xc2   :  { %420 = vmatmul.mubr.msk.bf16.vlgmr.msra.gmra.mrb[4].mxu1 %vm34_vm0, %v90_v41 }
 0x18d   :  { %v145_v54 = vpop.f32.mrb[0].mxu1 }
 0x18e   :  { %v382_v55 = vmul.f32 -1.442695, %v145_v54  ;;  %v413_v56 = vpop.f32.mrb[1].mxu1 }
 0x18f   :  { %v148_v57 = vpop.f32.mrb[2].mxu1 }
 0x190   :  { %467 = vpow2.f32 %v382_v55  ;;  %v383_v58 = vmul.f32 -1.442695, %v148_v57  ;;  %v414_v59 = vpop.f32.mrb[3].mxu1 }
 0x192   :  { %469 = vpow2.f32 %v383_v58 }
 0x195   :  { %v202_v60 = vpop.f32.mrb[4].mxu1 }
 0x196   :  { %v421_v61 = vpop.f32.mrb[5].mxu1 }
 0x197   :  { %v205_v62 = vpop.f32.mrb[6].mxu1 }
 0x198   :  { %v422_v63 = vpop.f32.mrb[7].mxu1 }
 0x19a   :  { %v468_v0 = vpop.eup %467 }
 0x19b   :  { %v215_v1 = vadd.f32 1.0, %v468_v0 }
 0x19c   :  { %v470_v2 = vpop.eup %469 }
 0x19d   :  { %471 = vrcp.f32 %v215_v1  ;;  %v216_v3 = vadd.f32 1.0, %v470_v2 }
 0x19f   :  { %473 = vrcp.f32 %v216_v3 }
 0x1a7   :  { %v472_v4 = vpop.eup %471 }
 0x1a8   :  { %v221_v5 = vmul.f32 %v472_v4, %v145_v54 }
 0x1a9   :  { %v474_v6 = vpop.eup %473 }
 0x1aa   :  { %v222_v7 = vmul.f32 %v474_v6, %v148_v57  ;;  %v223_v8 = vmul.f32 %v221_v5, %v202_v60 }
 0x1ac   :  { %v224_v9 = vmul.f32 %v222_v7, %v205_v62 }
 0x1ae   :  { %v227_v10 = vpack.c.bf16 %v224_v9, %v223_v8 }
 0x1b0   :  { %440 = vmatmul.mubr.bf16.vlgmr.msra.gmra.mrb[0].mxu0 %v227_v10 }
 0x283   :  { %v326_v12 = vpop.f32.mrb[0].mxu0 }
 0x284   :  { %v333_v14 = vadd.f32 %v326_v12, %v225_v11  ;;  %v441_v15 = vpop.f32.mrb[1].mxu0 }
 0x285   :  { %v329_v16 = vpop.f32.mrb[2].mxu0 }
 0x286   :  { %335 = vst.msk [vmem:[#allocation3] sm:$0xff] %vm34_vm0, %v333_v14  ;;  %v334_v17 = vadd.f32 %v329_v16, %v226_v13  ;;  %v442_v18 = vpop.f32.mrb[3].mxu0 }
 0x288   :  { %336 = vst.msk [vmem:[#allocation3 + $0x8] sm:$0xff] %vm34_vm0, %v334_v17 }
 0x28d   :  { %v340_v20 = vld [vmem:[#allocation3] sm:$0xff] }
 0x28e   :  { %v354_v22 = vmul.f32 %v347_v19, %v340_v20 }
 0x28f   :  { %v341_v23 = vld [vmem:[#allocation3 + $0x8] sm:$0xff] }
 0x290   :  { %356 = vst.msk [vmem:[#allocation4] sm:$0xff] %vm34_vm0, %v354_v22  ;;  %v355_v24 = vmul.f32 %v352_v21, %v341_v23 }
 0x292   :  { %357 = vst.msk [vmem:[#allocation4 + $0x8] sm:$0xff] %vm34_vm0, %v355_v24 }
 0x293   :  { %486 = shalt.err (!%p483_p4)
}
 0x294   :  { %s487_s10 = scalar_lea.hbm %s651_s7, 256 }
 0x295   :  { %p488_p5 = scmp.ne.s32.totalorder %s651_s7, %s487_s10  ;;  %p491_p6 = scmp.lt.u32.totalorder %s487_s10, %s651_s7 }
 0x297   :  { %p493_p7 = pnand %p491_p6, %p488_p5 }
 0x299   :  { %496 = shalt.err (!%p493_p7)
}
 0x29a   :  { %s503_s2 = smov 128   ;;  %s504_s14 = smov 8  }
 0x29b   :  { %369 = dma.vmem_to_hbm [thread:$0]  %s364_s6, 256, %s651_s7, [#allocation5], %s503_s2, %s503_s2, %s504_s14  }
 0x29c   :  { %497 = dma.done.wait [#allocation5], 256  }
 0x29d   :  { %498 = vsyncadd [#allocation5], 4294967040 }
 0x29e   :  { %373 = vsyncpa [#allocation5], 1 }

</bundles_post_ra>
